<compile_context>
chip_gen: v7x
topology: tpu7x:2x2x1
jax: 0.10.0
libtpu: 0.0.40
codegen_flags: <defaults>
</compile_context>

<pallas_src>
import jax
import jax.numpy as jnp
from jax.experimental import pallas as pl
from jax.experimental.pallas import tpu as pltpu


def spatial_attention_kernel(x_ref, w1t_ref, w2t_ref, w3t_ref, o_ref):
    # x_ref:   (1, C, TILE_HW)  bf16, channels on sublanes, pixels on lanes
    # w1t_ref: (C8, C)          bf16 conv1 weight (out, in)
    # w2t_ref: (C8, C8)         f32  conv2 weight (out, in)
    # w3t_ref: (1, C8)          f32  conv3 weight (out, in)
    # o_ref:   (1, 1, TILE_HW)  f32 sigmoid attention map (lane-dense store)
    x = x_ref[0]                                            # (C, TILE_HW) bf16

    # Dominant dot in bf16 -> f32 accumulate on the MXU.
    h1 = jnp.dot(w1t_ref[...], x, preferred_element_type=jnp.float32)
    h1 = jnp.maximum(h1, 0.0)                               # ReLU, (C8, TILE_HW) f32

    h2 = jnp.dot(w2t_ref[...], h1, preferred_element_type=jnp.float32)
    h2 = jnp.maximum(h2, 0.0)                               # ReLU, (C8, TILE_HW) f32

    h3 = jnp.dot(w3t_ref[...], h2, preferred_element_type=jnp.float32)
    o_ref[0] = jax.nn.sigmoid(h3).astype(o_ref.dtype)       # (1, TILE_HW)


def spatial_attention(x_nchw, w1t, w2t, w3t, *, tile_hw=32768):
    """x_nchw: (B, C, H, W).  Weights in PyTorch (out, in) layout.

    Returns (B, 1, H, W) float32.
    """
    B, C, H, W = x_nchw.shape
    C8 = w1t.shape[0]
    HW = H * W

    # Free reshape: NCHW is contiguous as (B, C, H*W).  Pixels -> lane axis.
    # Cast activations + first-layer weight to bf16 (halves HBM input bytes).
    x3d = x_nchw.reshape(B, C, HW).astype(jnp.bfloat16)
    w1t_b = w1t.astype(jnp.bfloat16)
    w2t_f = w2t.astype(jnp.float32)
    w3t_f = w3t.astype(jnp.float32)

    # Clamp the tile to the 128-padded spatial extent; keep it a multiple of 128.
    tile_hw = max(128, min(tile_hw, pl.cdiv(HW, 128) * 128))
    n_tiles = pl.cdiv(HW, tile_hw)

    # v7x megacore: make sure there are >= 2 parallel grid steps when possible.
    if B * n_tiles < 2 and HW > 128:
        tile_hw = max(128, pl.cdiv(pl.cdiv(HW, 2), 128) * 128)
        n_tiles = pl.cdiv(HW, tile_hw)

    # No jnp.pad: Pallas masks the ragged last spatial tile (OOB reads padded,
    # OOB output stores dropped).  All ops are per-pixel along lanes, so any
    # garbage in padded lanes never reaches a valid output column.
    out3d = pl.pallas_call(
        spatial_attention_kernel,
        out_shape=jax.ShapeDtypeStruct((B, 1, HW), jnp.float32),
        grid_spec=pltpu.PrefetchScalarGridSpec(
            num_scalar_prefetch=0,
            grid=(B, n_tiles),
            in_specs=[
                pl.BlockSpec((1, C, tile_hw), lambda b, j: (b, 0, j)),  # x tile
                pl.BlockSpec((C8, C), lambda b, j: (0, 0)),    # w1t (resident)
                pl.BlockSpec((C8, C8), lambda b, j: (0, 0)),   # w2t (resident)
                pl.BlockSpec((1, C8), lambda b, j: (0, 0)),    # w3t (resident)
            ],
            out_specs=pl.BlockSpec((1, 1, tile_hw), lambda b, j: (b, 0, j)),
        ),
        compiler_params=pltpu.CompilerParams(
            dimension_semantics=("parallel", "parallel"),
        ),
    )(x3d, w1t_b, w2t_f, w3t_f)

    # Reshape back to NCHW (free).
    return out3d.reshape(B, 1, H, W)


def reference(x_nchw, w1t, w2t, w3t):
    """Pure-JAX f32 reference with identical semantics (for sanity check)."""
    B, C, H, W = x_nchw.shape
    x = x_nchw.reshape(B, C, -1).astype(jnp.float32)
    h1 = jnp.maximum(jnp.einsum("oc,bcn->bon", w1t, x), 0.0)
    h2 = jnp.maximum(jnp.einsum("oc,bcn->bon", w2t, h1), 0.0)
    h3 = jax.nn.sigmoid(jnp.einsum("oc,bcn->bon", w3t, h2))
    return h3.reshape(B, 1, H, W)


if __name__ == "__main__":
    # Module config: dim=32  ->  hidden dim//8 = 4.
    dim = 32
    C8 = dim // 8
    B, H, W = 2, 16, 16

    key = jax.random.PRNGKey(0)
    kx, k1, k2, k3 = jax.random.split(key, 4)

    x = jax.random.normal(kx, (B, dim, H, W), dtype=jnp.float32)

    # Deterministic synthetic weights (Conv2d 1x1, bias=False), kaiming-ish
    # scale, stored in PyTorch's natural (out_channels, in_channels) layout.
    w1t = jax.random.normal(k1, (C8, dim), dtype=jnp.float32) * (2.0 / dim) ** 0.5
    w2t = jax.random.normal(k2, (C8, C8), dtype=jnp.float32) * (2.0 / C8) ** 0.5
    w3t = jax.random.normal(k3, (1, C8), dtype=jnp.float32) * (2.0 / C8) ** 0.5

    out = spatial_attention(x, w1t, w2t, w3t)
    out = jax.block_until_ready(out)

    ref = reference(x, w1t, w2t, w3t)
    assert out.shape == (B, 1, H, W), out.shape
    # bf16 activation path: sigmoid output error bounded well under 1e-2.
    assert jnp.allclose(out, ref, atol=1e-2, rtol=1e-2), float(
        jnp.max(jnp.abs(out - ref))
    )

    print("KERNEL_OK")
</pallas_src>

<mosaic_0001>
module attributes {stable_mosaic.version = 11 : i64} {
  func.func @spatial_attention_kernel(%arg0: i32, %arg1: i32, %arg2: memref<1x32x256xbf16, #tpu.memory_space<vmem>>, %arg3: memref<4x32xbf16, #tpu.memory_space<vmem>>, %arg4: memref<4x4xf32, #tpu.memory_space<vmem>>, %arg5: memref<1x4xf32, #tpu.memory_space<vmem>>, %arg6: memref<1x1x256xf32, #tpu.memory_space<vmem>>) attributes {dimension_semantics = [#tpu.dimension_semantics<parallel>, #tpu.dimension_semantics<parallel>], iteration_bounds = array<i64: 2, 1>, scalar_prefetch = 0 : i64, scratch_operands = 0 : i64, tpu.core_type = #tpu.core_type<tc>, window_params = [{transform_indices = @transform_0, window_bounds = array<i64: 1, 32, 256>}, {pipeline_mode = #tpu.pipeline_mode<synchronous>, transform_indices = @transform_1, window_bounds = array<i64: 4, 32>}, {pipeline_mode = #tpu.pipeline_mode<synchronous>, transform_indices = @transform_2, window_bounds = array<i64: 4, 4>}, {pipeline_mode = #tpu.pipeline_mode<synchronous>, transform_indices = @transform_3, window_bounds = array<i64: 1, 4>}, {transform_indices = @transform_4, window_bounds = array<i64: 1, 1, 256>}]} {
    %c0 = arith.constant 0 : index
    %c0_0 = arith.constant 0 : index
    %c0_1 = arith.constant 0 : index
    %0 = vector.load %arg2[%c0, %c0_0, %c0_1] : memref<1x32x256xbf16, #tpu.memory_space<vmem>>, vector<1x32x256xbf16>
    %1 = vector.shape_cast %0 : vector<1x32x256xbf16> to vector<32x256xbf16>
    %c0_2 = arith.constant 0 : index
    %c0_3 = arith.constant 0 : index
    %2 = vector.load %arg3[%c0_2, %c0_3] : memref<4x32xbf16, #tpu.memory_space<vmem>>, vector<4x32xbf16>
    %cst = arith.constant dense<0.000000e+00> : vector<4x256xf32>
    %3 = tpu.matmul %2, %1, %cst {dimension_numbers = #tpu.dot_dimension_numbers<[1], [0], [0], [1], [0, 0, 1, 1], [], []>} : vector<4x32xbf16>, vector<32x256xbf16>, vector<4x256xf32> -> vector<4x256xf32>
    %cst_4 = arith.constant 0.000000e+00 : f32
    %4 = vector.broadcast %cst_4 : f32 to vector<4x256xf32>
    %5 = arith.maximumf %3, %4 : vector<4x256xf32>
    %c0_5 = arith.constant 0 : index
    %c0_6 = arith.constant 0 : index
    %6 = vector.load %arg4[%c0_5, %c0_6] : memref<4x4xf32, #tpu.memory_space<vmem>>, vector<4x4xf32>
    %cst_7 = arith.constant dense<0.000000e+00> : vector<4x256xf32>
    %7 = tpu.matmul %6, %5, %cst_7 {dimension_numbers = #tpu.dot_dimension_numbers<[1], [0], [0], [1], [0, 0, 1, 1], [], []>} : vector<4x4xf32>, vector<4x256xf32>, vector<4x256xf32> -> vector<4x256xf32>
    %cst_8 = arith.constant 0.000000e+00 : f32
    %8 = vector.broadcast %cst_8 : f32 to vector<4x256xf32>
    %9 = arith.maximumf %7, %8 : vector<4x256xf32>
    %c0_9 = arith.constant 0 : index
    %c0_10 = arith.constant 0 : index
    %10 = vector.load %arg5[%c0_9, %c0_10] : memref<1x4xf32, #tpu.memory_space<vmem>>, vector<1x4xf32>
    %cst_11 = arith.constant dense<0.000000e+00> : vector<1x256xf32>
    %11 = tpu.matmul %10, %9, %cst_11 {dimension_numbers = #tpu.dot_dimension_numbers<[1], [0], [0], [1], [0, 0, 1, 1], [], []>} : vector<1x4xf32>, vector<4x256xf32>, vector<1x256xf32> -> vector<1x256xf32>
    %12 = arith.negf %11 : vector<1x256xf32>
    %13 = math.exp %12 : vector<1x256xf32>
    %cst_12 = arith.constant 1.000000e+00 : f32
    %14 = vector.broadcast %cst_12 : f32 to vector<1x256xf32>
    %15 = arith.addf %14, %13 : vector<1x256xf32>
    %16 = arith.divf %14, %15 : vector<1x256xf32>
    %c0_13 = arith.constant 0 : index
    %c0_14 = arith.constant 0 : index
    %c0_15 = arith.constant 0 : index
    %17 = vector.load %arg6[%c0_13, %c0_14, %c0_15] : memref<1x1x256xf32, #tpu.memory_space<vmem>>, vector<1x1x256xf32>
    %18 = vector.shape_cast %17 : vector<1x1x256xf32> to vector<1x256xf32>
    %19 = vector.shape_cast %16 : vector<1x256xf32> to vector<1x1x256xf32>
    tpu.vector_store %arg6[%c0_13, %c0_14, %c0_15], %19 {strides = array<i32>} : memref<1x1x256xf32, #tpu.memory_space<vmem>>, vector<1x1x256xf32>,
    return
  }
  func.func @transform_0(%arg0: i32, %arg1: i32) -> (i32, i32, i32) {
    %c0_i32 = arith.constant 0 : i32
    %c0_i32_0 = arith.constant 0 : i32
    return %arg0, %c0_i32, %arg1 : i32, i32, i32
  }
  func.func @transform_1(%arg0: i32, %arg1: i32) -> (i32, i32) {
    %c0_i32 = arith.constant 0 : i32
    %c0_i32_0 = arith.constant 0 : i32
    %c0_i32_1 = arith.constant 0 : i32
    return %c0_i32, %c0_i32_0 : i32, i32
  }
  func.func @transform_2(%arg0: i32, %arg1: i32) -> (i32, i32) {
    %c0_i32 = arith.constant 0 : i32
    %c0_i32_0 = arith.constant 0 : i32
    %c0_i32_1 = arith.constant 0 : i32
    return %c0_i32, %c0_i32_0 : i32, i32
  }
  func.func @transform_3(%arg0: i32, %arg1: i32) -> (i32, i32) {
    %c0_i32 = arith.constant 0 : i32
    %c0_i32_0 = arith.constant 0 : i32
    %c0_i32_1 = arith.constant 0 : i32
    return %c0_i32, %c0_i32_0 : i32, i32
  }
  func.func @transform_4(%arg0: i32, %arg1: i32) -> (i32, i32, i32) {
    %c0_i32 = arith.constant 0 : i32
    %c0_i32_0 = arith.constant 0 : i32
    return %arg0, %c0_i32, %arg1 : i32, i32, i32
  }
}

</mosaic_0001>

<bundles_post_ra>
// kernel: tpu_custom_call.1
= control target key start
LH: loop header
LB: loop body
LE: loop exit
PB: predicated region body
PF: predicated region fallthrough
CT: control target
= control target key end

     0   :  { %9 = vsyncpa [#allocation3], 0  ;;  %s1055_s0 = inlined_call_operand.hbm [shape: bf16[2,32,256], index: 0, kind: input, shape index: {}]   ;;  %s1056_s1 = inlined_call_operand.vmem [shape: bf16[4,32], index: 1, kind: input, shape index: {}]   ;;  %s1057_s2 = inlined_call_operand.vmem [shape: f32[4,4], index: 2, kind: input, shape index: {}]   ;;  %s1058_s3 = inlined_call_operand.vmem [shape: f32[1,4], index: 3, kind: input, shape index: {}]   ;;  %s1059_s4 = inlined_call_operand.hbm [shape: f32[2,1,256], index: 4, kind: output, shape index: {}]  }
   0x1   :  { %11 = vsyncpa [#allocation3 + $0x1], 0 }
   0x2   :  { %12 = vsyncpa [#allocation4], 0 }
   0x3   :  { %14 = vsyncpa [#allocation4 + $0x1], 0  ;;  %s868_s15 = smov 0   ;;  %s870_s16 = smov 0  }
   0x4   :  { %s872_s17 = smov 0   ;;  %s874_s18 = smov 0  }
   0x5   :  { %s876_s19 = smov 0   ;;  %s878_s20 = smov 0  }
   0x6 LB: > { %s611_s21 = sadd.s32 4294967295, %s834_s20   ;;  %s612_s22 = sadd.s32 4294967294, %s834_s20   ;;  %s834_s20 = sphi %s878_s20, %s20_s20   ;;  %s830_s19 = sphi %s876_s19, %s1074_s19   ;;  %s826_s18 = sphi %s874_s18, %s1073_s18   ;;  %s822_s17 = sphi %s872_s17, %s1072_s17   ;;  %s818_s16 = sphi %s870_s16, %s1071_s16   ;;  %s814_s15 = sphi %s868_s15, %s1070_s15  }
   0x7   : > { %s32_s23 = sadd.s32 1, %s830_s19  ;;  %s41_s24 = sadd.s32 1, %s822_s17 }
   0x8   : > { %p34_p0 = scmp.ge.s32.totalorder %s32_s23, 2  ;;  %p48_p1 = scmp.ne.s32.totalorder %s822_s17, %s818_s16 }
   0x9   : > { %p49_p2 = scmp.eq.s32.totalorder %s834_s20, 0  ;;  %p54_p3 = scmp.ne.s32.totalorder %s818_s16, %s814_s15 }
   0xa   : > { %s1076_s23 = smov (%p34_p0, %s32_s23), 0  ;;  %p55_p5 = scmp.eq.s32.totalorder %s611_s21, 0 }
   0xb   : > { %p909_p4 = por %p49_p2, %p48_p1  ;;  %s36_s26 = ssub.s32 %s830_s19, %s1076_s23 }
   0xc   : > { %p143_p6 = scmp.eq.s32.totalorder %s611_s21, 1  ;;  %p39_p7 = scmp.eq.s32.totalorder %s36_s26, 0 }
   0xd   : > { %p915_p8 = por %p55_p5, %p54_p3  ;;  %p149_p10 = scmp.eq.s32.totalorder %s612_s22, 1 }
   0xe   : > { %p919_p9 = por %p143_p6, %p48_p1  ;;  %p653_p13 = scmp.lt.s32.totalorder %s834_s20, 2 }
   0xf   : > { %s924_s29 = scalar_select %p39_p7, %s822_s17, %s41_s24  }
  0x10   : > { %s1063_s28 = scalar_select %p919_p9, 1, 0 }
  0x11   : > { %p926_p11 = por %p149_p10, %p54_p3  ;;  %s178_s5 = sand.u32 1, %s822_s17  }
  0x12   : > { %s615_s6 = sshll.u32 %s178_s5, 5  ;;  %s639_s7 = sshll.u32 %s830_s19, 9 }
  0x13   : > { %s1064_s30 = scalar_select %p926_p11, 1, 0 }
  0x14   : > { %s937_s10 = scalar_lea.hbm %s1055_s0, %s639_s7  ;;  %s182_s11 = scalar_lea.vmem [#allocation2], %s615_s6 }
  0x15   : > { %s191_s12 = sshll.u32 %s182_s11, 4  ;;  %p943_p0 = pnand %p653_p13, %p909_p4  ;;  %s939_s12 = int_to_ptr.vmem [resolvable:$true] %s191_s12 }
  0x16   : > { %s948_s14 = scalar_lea.sflag [#allocation3], %s178_s5  ;;  %s722_s21 = scalar_lea.hbm %s937_s10, 512 }
  0x17   : > { %p723_p2 = scmp.ne.s32.totalorder %s937_s10, %s722_s21  ;;  %p724_p3 = pneg %p943_p0 }
  0x18   : > { %s727_s25 = scalar_lea.hbm %s1055_s0, 1024  ;;  %p728_p4 = scmp.lt.u32.totalorder %s937_s10, %s1055_s0 }
  0x19   : > { %p725_p5 = pnand %p724_p3, %p723_p2  ;;  %p729_p7 = scmp.lt.u32.totalorder %s727_s25, %s722_s21 }
  0x1a   : > { %p731_p13 = scmp.lt.u32.totalorder %s722_s21, %s937_s10 }
  0x1b   : > { %p726_p6 = pneg %p725_p5  ;;  %p730_p10 = por %p729_p7, %p728_p4 }
  0x1d   : > { %p732_p12 = por %p731_p13, %p730_p10 }
  0x1f   : > { %p733_p1 = pnand %p732_p12, %p726_p6 }
  0x21   : > { %736 = shalt.err (!%p733_p1)
}
  0x22   : > { %s737_s5 = scalar_lea.vmem %s939_s12, 512  ;;  %s836_s7 = smov [#allocation2]  }
  0x23   : > { %p738_p2 = scmp.ne.s32.totalorder %s939_s12, %s737_s5  ;;  %s742_s8 = sshll.u32 %s836_s7, 4  ;;  %s743_s8 = int_to_ptr.vmem [resolvable:$false] %s742_s8 }
  0x24   : > { %s744_s9 = scalar_lea.vmem %s743_s8, 1024  ;;  %p745_p9 = scmp.lt.s32.totalorder %s939_s12, %s743_s8 }
  0x25   : > { %p740_p5 = pnand %p738_p2, %p724_p3  ;;  %p746_p4 = scmp.lt.s32.totalorder %s744_s9, %s737_s5 }
  0x27   : > { %p741_p11 = pneg %p740_p5  ;;  %p747_p7 = por %p746_p4, %p745_p9 }
  0x29   : > { %p748_p10 = pnand %p747_p7, %p741_p11 }
  0x2b   : > { %751 = shalt.err (!%p748_p10)
}
  0x2c   : > { %s837_s11 = smov 128   ;;  %s838_s21 = smov 8  }
  0x2d   : > { %648 = dma.hbm_to_vmem [thread:$0]  (!%p943_p0), %s937_s10, 512, %s939_s12, %s948_s14, %s837_s11, %s837_s11, %s838_s21  }
  0x2e   : > { %p199_p12 = scmp.lt.s32.totalorder %s834_s20, 3  ;;  %p1066_p1 = scmp.ge.s32.totalorder %s834_s20, 1 }
  0x30   : > { %p200_p3 = pnand %p1066_p1, %p199_p12 }
  0x31   : > { %s980_s22 = sand.u32 (!%p200_p3), 1, %s818_s16  }
  0x32   : > { %203 = sbr.rel (%p200_p3) target bundleno = 760 (0x2f8), region = 36  ;;  %s619_s24 = sshll.u32 (!%p200_p3), %s980_s22, 5 }
  0x33   : > { %s206_s25 = scalar_lea.sflag (!%p200_p3), [#allocation3], %s980_s22  ;;  %s209_s26 = scalar_lea.vmem (!%p200_p3), [#allocation2], %s619_s24 }
  0x39   : > { %805 = dma.done.wait (%p915_p8), %s206_s25, 512  }
  0x3a   : > { %807 = vsyncadd (%p915_p8), %s206_s25, 4294966784  ;;  %v839_v0 = vmov 0   ;;  %v708_v1 = vld [vmem:[%s209_s26 + $0x4] ss:$8 sps:$4 sm:$0xff]   ;;  %v710_v2 = vld [vmem:[%s209_s26] ss:$8 sps:$4 sm:$0xff]   ;;  %v493_v29 = vlaneseq }
  0x3b   : > { %298 = vmatprep.mubr.bf16.mxu0 %v839_v0  ;;  %266 = vmatprep.subr.bf16.mxu0 %v708_v1  ;;  %v711_v3 = vld [vmem:[%s209_s26 + $0x14] ss:$8 sps:$4 sm:$0xff]   ;;  %v713_v4 = vld [vmem:[%s209_s26 + $0x10] ss:$8 sps:$4 sm:$0xff]   ;;  %v241_v5 = vld [vmem:[%s1056_s1] sm:$0x3] }
  0x3c   : > { %267 = vmatpush1.bf16.msra.mxu0 %v710_v2  ;;  %vm262_vm0 = vcmask 261120   ;;  %v840_v6 = vmov 0.0   ;;  %vm314_vm1 = vcmask 1043456   ;;  %v309_v13 = vld [vmem:[%s1057_s2] sm:$0xf]  ;;  %vm310_vm2 = vcmask 31744  }
  0x3d   : > { %268 = vmatprep.subr.bf16.mxu0 %v711_v3  ;;  %385 = vmatprep.mubr.f32.mxu1 %v840_v6  ;;  %v394_v18 = vld [vmem:[%s1058_s3] sm:$0x1]  ;;  %v841_v27 = vmov 1966171168   ;;  %v494_v31 = vshrl.u32 %v493_v29, 7  ;;  %s620_s5 = sshll.u32 %s980_s22, 1 }
  0x3e   : > { %v491_v28 = vunpack.c.l.s4 %v841_v27  ;;  %s640_s7 = sshll.u32 %s826_s18, 5  ;;  %s233_s8 = scalar_lea.vmem [#allocation5], %s620_s5  ;;  %vm507_vm3 = vcmp.lt.s32.totalorder %v493_v29, 256 }
  0x3f   : > { %s527_s9 = sshll.u32 %s233_s8, 4  ;;  %s1006_s24 = scalar_lea.hbm %s1059_s4, %s640_s7  ;;  %s1008_s9 = int_to_ptr.vmem [resolvable:$true] %s527_s9 }
  0x40   : > { %269 = vmatpush1.bf16.msra.mxu0 %v713_v4  ;;  %v492_v30 = vunpack.c.0.s8 %v491_v28  ;;  %s511_s25 = scalar_lea.sflag [#allocation4], %s980_s22  ;;  %s752_s26 = scalar_lea.vmem %s1008_s9, 32 }
  0x41   : > { %p753_p8 = scmp.ne.s32.totalorder %s1008_s9, %s752_s26  ;;  %p1067_p9 = scmp.ne.s32.totalorder %s1063_s28, 0 }
  0x42   : > { %v495_v33 = vsub.s32 %v492_v30, %v494_v31  ;;  %s842_s18 = smov [#allocation5]  }
  0x43   : > { %625 = vmatmul.mubr.msk.bf16.vlgmr.msra.gmra.mrb[0].mxu0 %vm262_vm0, %v241_v5  ;;  %p754_p11 = pnand %p753_p8, %p1067_p9  ;;  %s756_s10 = sshll.u32 %s842_s18, 4  ;;  %s757_s10 = int_to_ptr.vmem [resolvable:$false] %s756_s10 }
  0x44   : > { %s758_s12 = scalar_lea.vmem %s757_s10, 64  ;;  %p759_p6 = scmp.lt.s32.totalorder %s1008_s9, %s757_s10 }
  0x45   : > { %p755_p0 = pneg %p754_p11  ;;  %p760_p13 = scmp.lt.s32.totalorder %s758_s12, %s752_s26 }
  0x47   : > { %p761_p2 = por %p760_p13, %p759_p6 }
  0x49   : > { %p762_p5 = pnand %p761_p2, %p755_p0 }
 0x116   : > { %v300_v7 = vpop.f32.mrb[0].mxu0 }
 0x117   : > { %v302_v8 = vpop.f32.mrb[1].mxu0  ;;  %v307_v11 = vmax.f32 %v300_v7, 0.0 }
 0x118   : > { %v308_v9 = vmax.f32 %v302_v8, 0.0  ;;  %v304_v10 = vpop.f32.mrb[2].mxu0 }
 0x119   : > { %v305_v12 = vpop.f32.mrb[3].mxu0 }
 0x11a   : > { %626 = vmatprep.subr.msk.mxu1 %vm314_vm1, %v308_v9 }
 0x11b   : > { %627 = vmatpush1.msk.msra.mxu1 %vm314_vm1, %v307_v11 }
 0x11c   : > { %628 = vmatmul.mubr.msk.f32.vlgmr.msra.gmra.mrb[0].mxu1 %vm310_vm2, %v309_v13 }
 0x11d   : > { %468 = vmatprep.mubr.f32.mxu1 %v840_v6 }
 0x1ef   : > { %v387_v14 = vpop.f32.mrb[0].mxu1 }
 0x1f0   : > { %v389_v15 = vpop.f32.mrb[1].mxu1  ;;  %v392_v17 = vmax.f32 %v387_v14, 0.0 }
 0x1f1   : > { %v393_v16 = vmax.f32 %v389_v15, 0.0 }
 0x1f3   : > { %629 = vmatprep.subr.msk.mxu1 %vm314_vm1, %v393_v16 }
 0x1f4   : > { %630 = vmatpush1.msk.msra.mxu1 %vm314_vm1, %v392_v17 }
 0x1f5   : > { %631 = vmatmul.mubr.msk.f32.vlgmr.msra.gmra.mrb[2].mxu1 %vm310_vm2, %v394_v18 }
 0x2c8   : > { %v470_v19 = vpop.f32.mrb[2].mxu1 }
 0x2c9   : > { %v632_v20 = vmul.f32 -1.442695, %v470_v19  ;;  %v472_v21 = vpop.f32.mrb[3].mxu1 }
 0x2ca   : > { %v633_v22 = vmul.f32 -1.442695, %v472_v21 }
 0x2cb   : > { %714 = vpow2.f32 %v632_v20 }
 0x2cc   : > { %716 = vpow2.f32 %v633_v22 }
 0x2d5   : > { %v715_v23 = vpop.eup %714 }
 0x2d6   : > { %v717_v24 = vpop.eup %716  ;;  %v481_v25 = vadd.f32 1.0, %v715_v23 }
 0x2d7   : > { %v482_v26 = vadd.f32 1.0, %v717_v24 }
 0x2d8   : > { %718 = vrcp.f32 %v481_v25 }
 0x2d9   : > { %720 = vrcp.f32 %v482_v26 }
 0x2e2   : > { %v719_v32 = vpop.eup %718 }
 0x2e3   : > { %v721_v34 = vpop.eup %720 }
 0x2e4   : > { %v489_v35 = vcombine.low %v719_v32, %v721_v34 }
 0x2e6   : > { %v496_v36 = vrot.slane %v489_v35, %v495_v33 }
 0x2e8   : > { %v503_v37 = vrot.slane %v496_v36, %v495_v33 }
 0x2ea   : > { %509 = vst.msk [vmem:[%s233_s8] sm:$0x3] %vm507_vm3, %v503_v37 }
 0x2eb   : > { %765 = shalt.err (!%p762_p5)
}
 0x2ec   : > { %s766_s22 = scalar_lea.hbm %s1006_s24, 32  ;;  %s770_s14 = scalar_lea.hbm %s1059_s4, 64 }
 0x2ed   : > { %p767_p4 = scmp.ne.s32.totalorder %s1006_s24, %s766_s22  ;;  %p771_p12 = scmp.lt.u32.totalorder %s1006_s24, %s1059_s4 }
 0x2ee   : > { %p772_p1 = scmp.lt.u32.totalorder %s770_s14, %s766_s22  ;;  %p774_p8 = scmp.lt.u32.totalorder %s766_s22, %s1006_s24 }
 0x2ef   : > { %p768_p7 = pnand %p767_p4, %p1067_p9 }
 0x2f0   : > { %p773_p3 = por %p772_p1, %p771_p12 }
 0x2f1   : > { %p769_p10 = pneg %p768_p7 }
 0x2f2   : > { %p775_p11 = por %p774_p8, %p773_p3 }
 0x2f4   : > { %p776_p0 = pnand %p775_p11, %p769_p10 }
 0x2f6   : > { %779 = shalt.err (!%p776_p0)
}
 0x2f7   : > { %643 = dma.vmem_to_hbm [thread:$0]  (%p1067_p9), %s1008_s9, 32, %s1006_s24, %s511_s25  }
 0x2f8 PF: > { %s539_s7 = sand.u32 1, %s814_s15   ;;  %p1068_p6 = scmp.ne.s32.totalorder %s1064_s30, 0 }
 0x2f9   : > { %p1069_p13 = scmp.ge.s32.totalorder %s834_s20, 2  ;;  %s540_s8 = scalar_lea.sflag [#allocation4], %s539_s7 }
 0x2fb   : > { %p650_p2 = pnand %p1069_p13, %p1068_p6 }
 0x2fd   : > { %809 = dma.done.wait (!%p650_p2), %s540_s8, 32  }
 0x2fe   : > { %811 = vsyncadd (!%p650_p2), %s540_s8, 4294967264  ;;  %s20_s20 = sadd.s32 1, %s834_s20   ;;  %s1070_s15 = smov %s818_s16 }
 0x2ff   : > { %p17_p5 = scmp.ge.s32.totalorder %s20_s20, 4   ;;  %s1071_s16 = smov %s822_s17 }
 0x300   : > { %s1072_s17 = smov %s924_s29  ;;  %s1073_s18 = smov %s830_s19 }
 0x301   : > { %s1074_s19 = smov %s1076_s23  ;;  %19 = sbr.rel (!%p17_p5) target bundleno = 6 (0x6), region = 81 }
 0x308   :  { %545 = vsyncpa [#allocation3], 1 }
 0x309   :  { %547 = vsyncpa [#allocation3 + $0x1], 1 }
 0x30a   :  { %548 = vsyncpa [#allocation4], 1 }
 0x30b   :  { %550 = vsyncpa [#allocation4 + $0x1], 1 }

</bundles_post_ra>
